<compile_context>
chip_gen: v7x
topology: tpu7x:2x2x1
jax: 0.10.0
libtpu: 0.0.40
codegen_flags: <defaults>
</compile_context>

<pallas_src>
import functools
from typing import NamedTuple

import numpy as np
import jax
import jax.numpy as jnp
from jax.experimental import pallas as pl
from jax.experimental.pallas import tpu as pltpu

LANE = 128        # feature dims padded to a multiple of this (lane-dense stores)
BIG_TILE = 512    # aggregation row / reduction tile once the graph is big enough


def _round_up(x, m):
    return (x + m - 1) // m * m


def _choose_tiles(n):
    """(n_pad, tm, tk) for the N x N aggregation.  Graphs > 512 nodes get
    512x512 tiles (>= 2 row tiles so both v7x TensorCores get work); small
    graphs use a single full-size tile (A traffic is negligible there)."""
    if n <= BIG_TILE:
        n_pad = _round_up(n, LANE)
        return n_pad, n_pad, n_pad
    n_pad = _round_up(n, BIG_TILE)
    return n_pad, BIG_TILE, BIG_TILE


# --------------------------------------------------------------------------
# Kernel 1: per-layer feature transform  H = X @ W   (row-tiled, W resident)
# --------------------------------------------------------------------------
def _feature_matmul_kernel(x_ref, w_ref, h_ref):
    h_ref[...] = jnp.dot(
        x_ref[...], w_ref[...], preferred_element_type=jnp.float32
    ).astype(h_ref.dtype)


def feature_matmul(x, w, *, tm):
    n, f_in = x.shape
    f_out = w.shape[1]
    cost = pl.CostEstimate(
        flops=2 * n * f_in * f_out,
        transcendentals=0,
        bytes_accessed=(x.size * 2 + w.size * 2 + n * f_out * 2),
    )
    vmem_need = (2 * tm * f_in * 2 + 2 * f_in * f_out * 2
                 + 2 * tm * f_out * 2 + (2 << 20))
    vmem_limit = int(min(max(vmem_need, 32 << 20), 100 << 20))
    # TODO(synk): add K-tiling over f_in when tm*f_in nears the scoped VMEM
    # limit (only relevant for very wide input features, esp. on v7x).
    return pl.pallas_call(
        _feature_matmul_kernel,
        out_shape=jax.ShapeDtypeStruct((n, f_out), jnp.bfloat16),
        grid_spec=pltpu.PrefetchScalarGridSpec(
            num_scalar_prefetch=0,
            grid=(n // tm,),
            in_specs=[
                pl.BlockSpec((tm, f_in), lambda i: (i, 0)),
                pl.BlockSpec((f_in, f_out), lambda i: (0, 0)),   # resident
            ],
            out_specs=pl.BlockSpec((tm, f_out), lambda i: (i, 0)),
        ),
        compiler_params=pltpu.CompilerParams(
            dimension_semantics=("parallel",),
            vmem_limit_bytes=vmem_limit),
        cost_estimate=cost,
    )(x, w)


# --------------------------------------------------------------------------
# Kernel 2: block-sparse neighbourhood aggregation + epilogue
#   out = relu(A @ H + b)
#   grid = (row tiles [parallel], nonzero-column-tile slots [arbitrary]);
#   scalar-prefetched (nz_cols, nz_cnt) drive a data-dependent A index_map so
#   zero A tiles are neither DMA'd nor matmul'd; H is resident in VMEM and the
#   matching (tk, f_out) slab is sliced in-kernel; f32 VMEM accumulator with
#   pl.when init (k==0) and bias+ReLU+cast finalize (last k).
# --------------------------------------------------------------------------
def _aggregate_kernel(tk, n_k, nz_cols_ref, nz_cnt_ref,
                      a_ref, h_ref, b_ref, o_ref, acc_ref):
    i = pl.program_id(0)
    k = pl.program_id(1)

    @pl.when(k == 0)
    def _():
        acc_ref[...] = jnp.zeros_like(acc_ref)

    @pl.when(k < nz_cnt_ref[i])
    def _():
        if n_k == 1:                       # single reduction tile: whole H
            h_slab = h_ref[...]
        else:                              # resident H: slice the needed slab
            start = pl.multiple_of(nz_cols_ref[i, k] * tk, tk)
            h_slab = h_ref[pl.ds(start, tk), :]
        acc_ref[...] += jnp.dot(a_ref[...], h_slab,
                                preferred_element_type=jnp.float32)

    @pl.when(k == pl.num_programs(1) - 1)
    def _():
        o_ref[...] = jnp.maximum(
            acc_ref[...] + b_ref[...], 0.0).astype(o_ref.dtype)


def gcn_aggregate(nz_cols, nz_cnt, a_p, h, bias2d, *, tm, tk, out_dtype):
    n_pad = a_p.shape[0]
    f_out = h.shape[1]
    n_m = n_pad // tm
    n_k = n_pad // tk
    max_nnz = nz_cols.shape[1]
    out_bytes = jnp.dtype(out_dtype).itemsize
    cost = pl.CostEstimate(
        flops=2 * n_m * max_nnz * tm * tk * f_out,
        transcendentals=0,
        bytes_accessed=(n_m * max_nnz * tm * tk * 2
                        + n_pad * f_out * 2
                        + n_pad * f_out * out_bytes),
    )
    vmem_need = (2 * tm * tk * 2            # A tiles, double buffered, bf16
                 + 2 * n_pad * f_out * 2    # resident H (budget 2 buffers)
                 + 2 * tm * f_out * out_bytes
                 + tm * f_out * 4           # f32 accumulator
                 + (2 << 20))
    vmem_limit = int(min(max(vmem_need, 32 << 20), 100 << 20))
    # TODO(synk): for very large graphs on v7x (64 MiB/core) fall back to a
    # streamed (data-dependent index_map) H slab instead of resident H.
    return pl.pallas_call(
        functools.partial(_aggregate_kernel, tk, n_k),
        out_shape=jax.ShapeDtypeStruct((n_pad, f_out), out_dtype),
        grid_spec=pltpu.PrefetchScalarGridSpec(
            num_scalar_prefetch=2,
            grid=(n_m, max_nnz),
            in_specs=[
                # A: data-dependent nonzero column-tile index; padding slots
                # repeat the last valid index so no extra DMA is issued.
                pl.BlockSpec((tm, tk), lambda i, k, nz, cnt: (i, nz[i, k])),
                # H: resident for the whole layer (fetched from HBM once).
                pl.BlockSpec((n_pad, f_out), lambda i, k, nz, cnt: (0, 0)),
                # bias: resident.
                pl.BlockSpec((1, f_out), lambda i, k, nz, cnt: (0, 0)),
            ],
            out_specs=pl.BlockSpec((tm, f_out), lambda i, k, nz, cnt: (i, 0)),
            scratch_shapes=[pltpu.VMEM((tm, f_out), jnp.float32)],
        ),
        compiler_params=pltpu.CompilerParams(
            dimension_semantics=("parallel", "arbitrary"),
            vmem_limit_bytes=vmem_limit),
        cost_estimate=cost,
    )(nz_cols, nz_cnt, a_p, h, bias2d)


# --------------------------------------------------------------------------
# Plain-JAX / host glue: normalized adjacency, one-time graph preparation
# --------------------------------------------------------------------------
def build_normalized_adjacency(edge_index, num_nodes):
    """Dense D^{-1/2} A_hat D^{-1/2} matching PyG gcn_norm (source->target):
    duplicate edges summed; self loops added only for nodes missing one."""
    src = edge_index[0]
    dst = edge_index[1]
    adj = jnp.zeros((num_nodes, num_nodes), jnp.float32)
    adj = adj.at[dst, src].add(1.0)                        # sum duplicate edges
    missing = jnp.where(jnp.diagonal(adj) > 0, 0.0, 1.0)   # remaining self loops
    adj = adj + jnp.diag(missing)
    deg = adj.sum(axis=1)
    dinv = jnp.where(deg > 0, jax.lax.rsqrt(deg), 0.0)
    return dinv[:, None] * adj * dinv[None, :]


class PreparedGraph(NamedTuple):
    n: int
    a_p: jax.Array        # (n_pad, n_pad) bf16, zero-padded
    nz_cols: jax.Array    # (n_m, max_nnz) int32 nonzero column-tile indices
    nz_cnt: jax.Array     # (n_m,) int32 counts


def prepare_graph(a_norm):
    """Per-graph preprocessing hoisted out of the forward path: zero-pad +
    bf16-cast A and build block-sparsity metadata for scalar prefetch."""
    n = int(a_norm.shape[0])
    n_pad, tm, tk = _choose_tiles(n)
    a_np = np.zeros((n_pad, n_pad), np.float32)
    a_np[:n, :n] = np.asarray(a_norm, np.float32)
    n_m, n_k = n_pad // tm, n_pad // tk
    blk_nz = (a_np.reshape(n_m, tm, n_k, tk) != 0.0).any(axis=(1, 3))
    counts = blk_nz.sum(axis=1).astype(np.int32)
    max_nnz = max(int(counts.max()), 1)
    nz_cols = np.zeros((n_m, max_nnz), np.int32)
    for i in range(n_m):
        cols = np.nonzero(blk_nz[i])[0].astype(np.int32)
        if cols.size:
            nz_cols[i, :cols.size] = cols
            nz_cols[i, cols.size:] = cols[-1]   # repeat last -> no extra DMA
    return PreparedGraph(n=n,
                         a_p=jnp.asarray(a_np, jnp.bfloat16),
                         nz_cols=jnp.asarray(nz_cols),
                         nz_cnt=jnp.asarray(counts))


class EncoderModPallas:
    """skip=False branch of EncoderMod (base_model=GCNConv, activation=ReLU),
    eval mode (dropout == identity)."""
    # TODO(synk): training-mode dropout would need pltpu.prng_seed /
    # pltpu.prng_random_bits masking in the aggregation epilogue.

    def __init__(self, in_channels, out_channels, k=2, key=None):
        assert k >= 2
        self.k = k
        self.out_channels = out_channels
        self.in_dim = in_channels
        key = jax.random.PRNGKey(0) if key is None else key

        dims = [in_channels] + [2 * out_channels] * (k - 1) + [out_channels]
        self.pdims = [_round_up(d, LANE) for d in dims]     # lane-dense padded

        self.weights = []      # bf16, zero-padded to (pdims[i], pdims[i+1])
        self.biases = []       # f32,  zero-padded to (1, pdims[i+1])
        self.weights_f32 = []  # unpadded, for reference checking
        self.biases_f32 = []
        for i in range(k):
            key, wk = jax.random.split(key)
            fan_in, fan_out = dims[i], dims[i + 1]
            scale = (6.0 / (fan_in + fan_out)) ** 0.5        # Glorot uniform
            w = jax.random.uniform(wk, (fan_in, fan_out), jnp.float32,
                                   minval=-scale, maxval=scale)
            b = jnp.zeros((fan_out,), jnp.float32)
            w_pad = jnp.zeros((self.pdims[i], self.pdims[i + 1]), jnp.float32)
            w_pad = w_pad.at[:fan_in, :fan_out].set(w)
            b_pad = jnp.zeros((1, self.pdims[i + 1]), jnp.float32)
            b_pad = b_pad.at[0, :fan_out].set(b)
            self.weights.append(w_pad.astype(jnp.bfloat16))
            self.biases.append(b_pad)
            self.weights_f32.append(w)
            self.biases_f32.append(b)

    def __call__(self, x, graph: PreparedGraph):
        return self._forward(x, graph.a_p, graph.nz_cols, graph.nz_cnt, graph.n)

    @functools.partial(jax.jit, static_argnums=(0, 5))
    def _forward(self, x, a_p, nz_cols, nz_cnt, n):
        n_pad, tm, tk = _choose_tiles(n)
        tm_f = min(BIG_TILE, n_pad)          # divides n_pad by construction

        # Pad nodes/features: padded A rows/cols are zero so padded node rows
        # stay inert through both layers and are sliced off at the end.
        h = jnp.zeros((n_pad, self.pdims[0]), jnp.bfloat16)
        h = h.at[:n, : self.in_dim].set(x.astype(jnp.bfloat16))

        for i in range(self.k):
            hw = feature_matmul(h, self.weights[i], tm=tm_f)
            last = i == self.k - 1
            h = gcn_aggregate(
                nz_cols, nz_cnt, a_p, hw, self.biases[i], tm=tm, tk=tk,
                out_dtype=jnp.float32 if last else jnp.bfloat16)
        # NOTE: padded node rows equal relu(bias); they never contaminate real
        # rows (padded A columns are zero) and are dropped by this slice.
        return h[:n, : self.out_channels]


if __name__ == "__main__":
    def run_case(num_nodes, in_channels, out_channels, num_edges):
        key = jax.random.PRNGKey(0)
        kx, ke, kp = jax.random.split(key, 3)

        x = jax.random.normal(kx, (num_nodes, in_channels), jnp.float32)
        edge_index = jax.random.randint(
            ke, (2, num_edges), 0, num_nodes, jnp.int32)
        a_norm = build_normalized_adjacency(edge_index, num_nodes)

        model = EncoderModPallas(in_channels, out_channels, k=2, key=kp)
        graph = prepare_graph(a_norm)
        out = jax.block_until_ready(model(x, graph))

        assert out.shape == (num_nodes, out_channels)
        assert bool(jnp.all(jnp.isfinite(out)))

        # Pure-JAX f32 reference (bf16 streams => loose tolerance).
        h = x
        for i in range(model.k):
            h = jnp.maximum(
                a_norm @ (h @ model.weights_f32[i]) + model.biases_f32[i], 0.0)
        err = float(jnp.max(jnp.abs(out - h)))
        tol = 5e-2 * (1.0 + float(jnp.max(jnp.abs(h))))
        assert err <= tol, f"max abs error {err} > tol {tol}"

    # Tiny graph: single 128x128 tile, one nonzero block.
    run_case(num_nodes=16, in_channels=32, out_channels=16, num_edges=48)
    # Larger graph: exercises 512x512 tiling, the block-sparse A index_map,
    # and the dynamic resident-H slab slice (n_pad=1024 -> 2x2 A tiles).
    run_case(num_nodes=600, in_channels=64, out_channels=16, num_edges=2400)

    print("KERNEL_OK")
</pallas_src>

<mosaic_0001>
module attributes {stable_mosaic.version = 11 : i64} {
  func.func @_feature_matmul_kernel(%arg0: i32, %arg1: memref<128x128xbf16, #tpu.memory_space<vmem>>, %arg2: memref<128x128xbf16, #tpu.memory_space<vmem>>, %arg3: memref<128x128xbf16, #tpu.memory_space<vmem>>) attributes {dimension_semantics = [#tpu.dimension_semantics<parallel>], iteration_bounds = array<i64: 1>, scalar_prefetch = 0 : i64, scratch_operands = 0 : i64, tpu.core_type = #tpu.core_type<tc>, window_params = [{transform_indices = @transform_0, window_bounds = array<i64: 128, 128>}, {pipeline_mode = #tpu.pipeline_mode<synchronous>, transform_indices = @transform_1, window_bounds = array<i64: 128, 128>}, {transform_indices = @transform_2, window_bounds = array<i64: 128, 128>}]} {
    %c0 = arith.constant 0 : index
    %c0_0 = arith.constant 0 : index
    %0 = vector.load %arg1[%c0, %c0_0] : memref<128x128xbf16, #tpu.memory_space<vmem>>, vector<128x128xbf16>
    %c0_1 = arith.constant 0 : index
    %c0_2 = arith.constant 0 : index
    %1 = vector.load %arg2[%c0_1, %c0_2] : memref<128x128xbf16, #tpu.memory_space<vmem>>, vector<128x128xbf16>
    %cst = arith.constant dense<0.000000e+00> : vector<128x128xf32>
    %2 = tpu.matmul %0, %1, %cst {dimension_numbers = #tpu.dot_dimension_numbers<[1], [0], [0], [1], [0, 0, 1, 1], [], []>} : vector<128x128xbf16>, vector<128x128xbf16>, vector<128x128xf32> -> vector<128x128xf32>
    %3 = arith.truncf %2 : vector<128x128xf32> to vector<128x128xbf16>
    %c0_3 = arith.constant 0 : index
    %c0_4 = arith.constant 0 : index
    %4 = vector.load %arg3[%c0_3, %c0_4] : memref<128x128xbf16, #tpu.memory_space<vmem>>, vector<128x128xbf16>
    tpu.vector_store %arg3[%c0_3, %c0_4], %3 {strides = array<i32>} : memref<128x128xbf16, #tpu.memory_space<vmem>>, vector<128x128xbf16>,
    return
  }
  func.func @transform_0(%arg0: i32) -> (i32, i32) {
    %c0_i32 = arith.constant 0 : i32
    %c0_i32_0 = arith.constant 0 : i32
    return %arg0, %c0_i32 : i32, i32
  }
  func.func @transform_1(%arg0: i32) -> (i32, i32) {
    %c0_i32 = arith.constant 0 : i32
    %c0_i32_0 = arith.constant 0 : i32
    %c0_i32_1 = arith.constant 0 : i32
    return %c0_i32, %c0_i32_0 : i32, i32
  }
  func.func @transform_2(%arg0: i32) -> (i32, i32) {
    %c0_i32 = arith.constant 0 : i32
    %c0_i32_0 = arith.constant 0 : i32
    return %arg0, %c0_i32 : i32, i32
  }
}

module attributes {stable_mosaic.version = 11 : i64} {
  func.func @_aggregate_kernel(%arg0: i32, %arg1: i32, %arg2: memref<1x1xi32, #tpu.memory_space<smem>>, %arg3: memref<1xi32, #tpu.memory_space<smem>>, %arg4: memref<128x128xbf16, #tpu.memory_space<vmem>>, %arg5: memref<128x128xbf16, #tpu.memory_space<vmem>>, %arg6: memref<1x128xf32, #tpu.memory_space<vmem>>, %arg7: memref<128x128xf32, #tpu.memory_space<vmem>>, %arg8: memref<128x128xf32, #tpu.memory_space<vmem>>) attributes {dimension_semantics = [#tpu.dimension_semantics<parallel>, #tpu.dimension_semantics<arbitrary>], iteration_bounds = array<i64: 1, 1>, scalar_prefetch = 2 : i64, scratch_operands = 1 : i64, tpu.core_type = #tpu.core_type<tc>, window_params = [{transform_indices = @transform_0, window_bounds = array<i64: 128, 128>}, {pipeline_mode = #tpu.pipeline_mode<synchronous>, transform_indices = @transform_1, window_bounds = array<i64: 128, 128>}, {pipeline_mode = #tpu.pipeline_mode<synchronous>, transform_indices = @transform_2, window_bounds = array<i64: 1, 128>}, {transform_indices = @transform_3, window_bounds = array<i64: 128, 128>}]} {
    %c0_i32 = arith.constant 0 : i32
    %0 = arith.cmpi eq, %arg1, %c0_i32 : i32
    %1 = arith.extui %0 : i1 to i32
    %c0_i32_0 = arith.constant 0 : i32
    %2 = arith.cmpi ne, %1, %c0_i32_0 : i32
    scf.if %2 {
      %cst = arith.constant 0.000000e+00 : f32
      %11 = vector.broadcast %cst : f32 to vector<128x128xf32>
      %c0 = arith.constant 0 : index
      %c0_4 = arith.constant 0 : index
      %12 = vector.load %arg8[%c0, %c0_4] : memref<128x128xf32, #tpu.memory_space<vmem>>, vector<128x128xf32>
      tpu.vector_store %arg8[%c0, %c0_4], %11 {strides = array<i32>} : memref<128x128xf32, #tpu.memory_space<vmem>>, vector<128x128xf32>,
    } else {
    }
    %3 = arith.index_cast %arg0 : i32 to index
    %4 = memref.load %arg3[%3] : memref<1xi32, #tpu.memory_space<smem>>
    %5 = arith.cmpi slt, %arg1, %4 : i32
    %6 = arith.extui %5 : i1 to i32
    %c0_i32_1 = arith.constant 0 : i32
    %7 = arith.cmpi ne, %6, %c0_i32_1 : i32
    scf.if %7 {
      %c0 = arith.constant 0 : index
      %c0_4 = arith.constant 0 : index
      %11 = vector.load %arg5[%c0, %c0_4] : memref<128x128xbf16, #tpu.memory_space<vmem>>, vector<128x128xbf16>
      %c0_5 = arith.constant 0 : index
      %c0_6 = arith.constant 0 : index
      %12 = vector.load %arg8[%c0_5, %c0_6] : memref<128x128xf32, #tpu.memory_space<vmem>>, vector<128x128xf32>
      %c0_7 = arith.constant 0 : index
      %c0_8 = arith.constant 0 : index
      %13 = vector.load %arg4[%c0_7, %c0_8] : memref<128x128xbf16, #tpu.memory_space<vmem>>, vector<128x128xbf16>
      %cst = arith.constant dense<0.000000e+00> : vector<128x128xf32>
      %14 = tpu.matmul %13, %11, %cst {dimension_numbers = #tpu.dot_dimension_numbers<[1], [0], [0], [1], [0, 0, 1, 1], [], []>} : vector<128x128xbf16>, vector<128x128xbf16>, vector<128x128xf32> -> vector<128x128xf32>
      %15 = arith.addf %12, %14 : vector<128x128xf32>
      %c0_9 = arith.constant 0 : index
      %c0_10 = arith.constant 0 : index
      %16 = vector.load %arg8[%c0_9, %c0_10] : memref<128x128xf32, #tpu.memory_space<vmem>>, vector<128x128xf32>
      tpu.vector_store %arg8[%c0_9, %c0_10], %15 {strides = array<i32>} : memref<128x128xf32, #tpu.memory_space<vmem>>, vector<128x128xf32>,
    } else {
    }
    %c0_i32_2 = arith.constant 0 : i32
    %8 = arith.cmpi eq, %arg1, %c0_i32_2 : i32
    %9 = arith.extui %8 : i1 to i32
    %c0_i32_3 = arith.constant 0 : i32
    %10 = arith.cmpi ne, %9, %c0_i32_3 : i32
    scf.if %10 {
      %c0 = arith.constant 0 : index
      %c0_4 = arith.constant 0 : index
      %11 = vector.load %arg8[%c0, %c0_4] : memref<128x128xf32, #tpu.memory_space<vmem>>, vector<128x128xf32>
      %c0_5 = arith.constant 0 : index
      %c0_6 = arith.constant 0 : index
      %12 = vector.load %arg6[%c0_5, %c0_6] : memref<1x128xf32, #tpu.memory_space<vmem>>, vector<1x128xf32>
      %13 = vector.broadcast %12 : vector<1x128xf32> to vector<128x128xf32>
      %14 = arith.addf %11, %13 : vector<128x128xf32>
      %cst = arith.constant 0.000000e+00 : f32
      %15 = vector.broadcast %cst : f32 to vector<128x128xf32>
      %16 = arith.maximumf %14, %15 : vector<128x128xf32>
      %c0_7 = arith.constant 0 : index
      %c0_8 = arith.constant 0 : index
      %17 = vector.load %arg7[%c0_7, %c0_8] : memref<128x128xf32, #tpu.memory_space<vmem>>, vector<128x128xf32>
      tpu.vector_store %arg7[%c0_7, %c0_8], %16 {strides = array<i32>} : memref<128x128xf32, #tpu.memory_space<vmem>>, vector<128x128xf32>,
    } else {
    }
    return
  }
  func.func @transform_0(%arg0: i32, %arg1: i32, %arg2: memref<1x1xi32, #tpu.memory_space<smem>>, %arg3: memref<1xi32, #tpu.memory_space<smem>>) -> (i32, i32) {
    %0 = arith.index_cast %arg0 : i32 to index
    %1 = arith.index_cast %arg1 : i32 to index
    %2 = memref.load %arg2[%0, %1] : memref<1x1xi32, #tpu.memory_space<smem>>
    %c0_i32 = arith.constant 0 : i32
    return %arg0, %2 : i32, i32
  }
  func.func @transform_1(%arg0: i32, %arg1: i32, %arg2: memref<1x1xi32, #tpu.memory_space<smem>>, %arg3: memref<1xi32, #tpu.memory_space<smem>>) -> (i32, i32) {
    %c0_i32 = arith.constant 0 : i32
    %c0_i32_0 = arith.constant 0 : i32
    %c0_i32_1 = arith.constant 0 : i32
    return %c0_i32, %c0_i32_0 : i32, i32
  }
  func.func @transform_2(%arg0: i32, %arg1: i32, %arg2: memref<1x1xi32, #tpu.memory_space<smem>>, %arg3: memref<1xi32, #tpu.memory_space<smem>>) -> (i32, i32) {
    %c0_i32 = arith.constant 0 : i32
    %c0_i32_0 = arith.constant 0 : i32
    %c0_i32_1 = arith.constant 0 : i32
    return %c0_i32, %c0_i32_0 : i32, i32
  }
  func.func @transform_3(%arg0: i32, %arg1: i32, %arg2: memref<1x1xi32, #tpu.memory_space<smem>>, %arg3: memref<1xi32, #tpu.memory_space<smem>>) -> (i32, i32) {
    %c0_i32 = arith.constant 0 : i32
    %c0_i32_0 = arith.constant 0 : i32
    return %arg0, %c0_i32 : i32, i32
  }
}

module attributes {stable_mosaic.version = 11 : i64} {
  func.func @_aggregate_kernel(%arg0: i32, %arg1: i32, %arg2: memref<1x1xi32, #tpu.memory_space<smem>>, %arg3: memref<1xi32, #tpu.memory_space<smem>>, %arg4: memref<128x128xbf16, #tpu.memory_space<vmem>>, %arg5: memref<128x128xbf16, #tpu.memory_space<vmem>>, %arg6: memref<1x128xf32, #tpu.memory_space<vmem>>, %arg7: memref<128x128xbf16, #tpu.memory_space<vmem>>, %arg8: memref<128x128xf32, #tpu.memory_space<vmem>>) attributes {dimension_semantics = [#tpu.dimension_semantics<parallel>, #tpu.dimension_semantics<arbitrary>], iteration_bounds = array<i64: 1, 1>, scalar_prefetch = 2 : i64, scratch_operands = 1 : i64, tpu.core_type = #tpu.core_type<tc>, window_params = [{transform_indices = @transform_0, window_bounds = array<i64: 128, 128>}, {pipeline_mode = #tpu.pipeline_mode<synchronous>, transform_indices = @transform_1, window_bounds = array<i64: 128, 128>}, {pipeline_mode = #tpu.pipeline_mode<synchronous>, transform_indices = @transform_2, window_bounds = array<i64: 1, 128>}, {transform_indices = @transform_3, window_bounds = array<i64: 128, 128>}]} {
    %c0_i32 = arith.constant 0 : i32
    %0 = arith.cmpi eq, %arg1, %c0_i32 : i32
    %1 = arith.extui %0 : i1 to i32
    %c0_i32_0 = arith.constant 0 : i32
    %2 = arith.cmpi ne, %1, %c0_i32_0 : i32
    scf.if %2 {
      %cst = arith.constant 0.000000e+00 : f32
      %11 = vector.broadcast %cst : f32 to vector<128x128xf32>
      %c0 = arith.constant 0 : index
      %c0_4 = arith.constant 0 : index
      %12 = vector.load %arg8[%c0, %c0_4] : memref<128x128xf32, #tpu.memory_space<vmem>>, vector<128x128xf32>
      tpu.vector_store %arg8[%c0, %c0_4], %11 {strides = array<i32>} : memref<128x128xf32, #tpu.memory_space<vmem>>, vector<128x128xf32>,
    } else {
    }
    %3 = arith.index_cast %arg0 : i32 to index
    %4 = memref.load %arg3[%3] : memref<1xi32, #tpu.memory_space<smem>>
    %5 = arith.cmpi slt, %arg1, %4 : i32
    %6 = arith.extui %5 : i1 to i32
    %c0_i32_1 = arith.constant 0 : i32
    %7 = arith.cmpi ne, %6, %c0_i32_1 : i32
    scf.if %7 {
      %c0 = arith.constant 0 : index
      %c0_4 = arith.constant 0 : index
      %11 = vector.load %arg5[%c0, %c0_4] : memref<128x128xbf16, #tpu.memory_space<vmem>>, vector<128x128xbf16>
      %c0_5 = arith.constant 0 : index
      %c0_6 = arith.constant 0 : index
      %12 = vector.load %arg8[%c0_5, %c0_6] : memref<128x128xf32, #tpu.memory_space<vmem>>, vector<128x128xf32>
      %c0_7 = arith.constant 0 : index
      %c0_8 = arith.constant 0 : index
      %13 = vector.load %arg4[%c0_7, %c0_8] : memref<128x128xbf16, #tpu.memory_space<vmem>>, vector<128x128xbf16>
      %cst = arith.constant dense<0.000000e+00> : vector<128x128xf32>
      %14 = tpu.matmul %13, %11, %cst {dimension_numbers = #tpu.dot_dimension_numbers<[1], [0], [0], [1], [0, 0, 1, 1], [], []>} : vector<128x128xbf16>, vector<128x128xbf16>, vector<128x128xf32> -> vector<128x128xf32>
      %15 = arith.addf %12, %14 : vector<128x128xf32>
      %c0_9 = arith.constant 0 : index
      %c0_10 = arith.constant 0 : index
      %16 = vector.load %arg8[%c0_9, %c0_10] : memref<128x128xf32, #tpu.memory_space<vmem>>, vector<128x128xf32>
      tpu.vector_store %arg8[%c0_9, %c0_10], %15 {strides = array<i32>} : memref<128x128xf32, #tpu.memory_space<vmem>>, vector<128x128xf32>,
    } else {
    }
    %c0_i32_2 = arith.constant 0 : i32
    %8 = arith.cmpi eq, %arg1, %c0_i32_2 : i32
    %9 = arith.extui %8 : i1 to i32
    %c0_i32_3 = arith.constant 0 : i32
    %10 = arith.cmpi ne, %9, %c0_i32_3 : i32
    scf.if %10 {
      %c0 = arith.constant 0 : index
      %c0_4 = arith.constant 0 : index
      %11 = vector.load %arg8[%c0, %c0_4] : memref<128x128xf32, #tpu.memory_space<vmem>>, vector<128x128xf32>
      %c0_5 = arith.constant 0 : index
      %c0_6 = arith.constant 0 : index
      %12 = vector.load %arg6[%c0_5, %c0_6] : memref<1x128xf32, #tpu.memory_space<vmem>>, vector<1x128xf32>
      %13 = vector.broadcast %12 : vector<1x128xf32> to vector<128x128xf32>
      %14 = arith.addf %11, %13 : vector<128x128xf32>
      %cst = arith.constant 0.000000e+00 : f32
      %15 = vector.broadcast %cst : f32 to vector<128x128xf32>
      %16 = arith.maximumf %14, %15 : vector<128x128xf32>
      %17 = arith.truncf %16 : vector<128x128xf32> to vector<128x128xbf16>
      %c0_7 = arith.constant 0 : index
      %c0_8 = arith.constant 0 : index
      %18 = vector.load %arg7[%c0_7, %c0_8] : memref<128x128xbf16, #tpu.memory_space<vmem>>, vector<128x128xbf16>
      tpu.vector_store %arg7[%c0_7, %c0_8], %17 {strides = array<i32>} : memref<128x128xbf16, #tpu.memory_space<vmem>>, vector<128x128xbf16>,
    } else {
    }
    return
  }
  func.func @transform_0(%arg0: i32, %arg1: i32, %arg2: memref<1x1xi32, #tpu.memory_space<smem>>, %arg3: memref<1xi32, #tpu.memory_space<smem>>) -> (i32, i32) {
    %0 = arith.index_cast %arg0 : i32 to index
    %1 = arith.index_cast %arg1 : i32 to index
    %2 = memref.load %arg2[%0, %1] : memref<1x1xi32, #tpu.memory_space<smem>>
    %c0_i32 = arith.constant 0 : i32
    return %arg0, %2 : i32, i32
  }
  func.func @transform_1(%arg0: i32, %arg1: i32, %arg2: memref<1x1xi32, #tpu.memory_space<smem>>, %arg3: memref<1xi32, #tpu.memory_space<smem>>) -> (i32, i32) {
    %c0_i32 = arith.constant 0 : i32
    %c0_i32_0 = arith.constant 0 : i32
    %c0_i32_1 = arith.constant 0 : i32
    return %c0_i32, %c0_i32_0 : i32, i32
  }
  func.func @transform_2(%arg0: i32, %arg1: i32, %arg2: memref<1x1xi32, #tpu.memory_space<smem>>, %arg3: memref<1xi32, #tpu.memory_space<smem>>) -> (i32, i32) {
    %c0_i32 = arith.constant 0 : i32
    %c0_i32_0 = arith.constant 0 : i32
    %c0_i32_1 = arith.constant 0 : i32
    return %c0_i32, %c0_i32_0 : i32, i32
  }
  func.func @transform_3(%arg0: i32, %arg1: i32, %arg2: memref<1x1xi32, #tpu.memory_space<smem>>, %arg3: memref<1xi32, #tpu.memory_space<smem>>) -> (i32, i32) {
    %c0_i32 = arith.constant 0 : i32
    %c0_i32_0 = arith.constant 0 : i32
    return %arg0, %c0_i32 : i32, i32
  }
}

</mosaic_0001>

<bundles_post_ra>
// kernel: _forward.4
= control target key start
LH: loop header
LB: loop body
LE: loop exit
PB: predicated region body
PF: predicated region fallthrough
CT: control target
= control target key end

     0   :  { %s583_s1 = inlined_call_operand.vmem [shape: bf16[128,128], index: 1, kind: input, shape index: {}]   ;;  %s584_s0 = inlined_call_operand.vmem [shape: bf16[128,128], index: 0, kind: input, shape index: {}]   ;;  %s585_s2 = inlined_call_operand.vmem [shape: bf16[128,128], index: 2, kind: output, shape index: {}]  }
   0x1   :  { %v480_v0 = vld [vmem:[%s583_s1] sm:$0xff]   ;;  %v481_v1 = vld [vmem:[%s583_s1 + $0x8] sm:$0xff]   ;;  %v482_v2 = vld [vmem:[%s583_s1 + $0x10] sm:$0xff]  }
   0x2   :  { %432 = vmatprep.subr.bf16.mxu0 %v480_v0  ;;  %464 = vmatprep.subr.bf16.mxu1 %v480_v0  ;;  %v483_v3 = vld [vmem:[%s583_s1 + $0x18] sm:$0xff]   ;;  %v488_v4 = vld [vmem:[%s584_s0] sm:$0xff]   ;;  %v485_v7 = vld [vmem:[%s583_s1 + $0x28] sm:$0xff]  }
   0x3   :  { %433 = vmatpush3.bf16.msra.mxu0 %v480_v0  ;;  %472 = vmatpush3.bf16.msra.mxu1 %v480_v0  ;;  %v489_v5 = vld [vmem:[%s584_s0 + $0x20] sm:$0xff]   ;;  %v486_v8 = vld [vmem:[%s583_s1 + $0x30] sm:$0xff]   ;;  %v487_v9 = vld [vmem:[%s583_s1 + $0x38] sm:$0xff]  }
   0x4   :  { %434 = vmatprep.subr.bf16.mxu0 %v481_v1  ;;  %465 = vmatprep.subr.bf16.mxu1 %v481_v1  ;;  %v484_v6 = vld [vmem:[%s583_s1 + $0x20] sm:$0xff]   ;;  %v490_v10 = vld [vmem:[%s584_s0 + $0x8] sm:$0xff]   ;;  %v492_v12 = vld [vmem:[%s584_s0 + $0x10] sm:$0xff]  }
   0x5   :  { %448 = vmatprep.mubr.bf16.mxu0 %v488_v4  ;;  %456 = vmatprep.mubr.bf16.mxu1 %v489_v5  ;;  %v491_v11 = vld [vmem:[%s584_s0 + $0x28] sm:$0xff]   ;;  %v493_v13 = vld [vmem:[%s584_s0 + $0x30] sm:$0xff]   ;;  %v494_v14 = vld [vmem:[%s584_s0 + $0x18] sm:$0xff]  }
   0x6   :  { %v495_v15 = vld [vmem:[%s584_s0 + $0x38] sm:$0xff]  }
   0x7   :  { %435 = vmatpush3.bf16.msra.mxu0 %v481_v1  ;;  %473 = vmatpush3.bf16.msra.mxu1 %v481_v1 }
   0x8   :  { %436 = vmatprep.subr.bf16.mxu0 %v482_v2  ;;  %466 = vmatprep.subr.bf16.mxu1 %v482_v2 }
   0xb   :  { %437 = vmatpush3.bf16.msra.mxu0 %v482_v2  ;;  %474 = vmatpush3.bf16.msra.mxu1 %v482_v2 }
   0xc   :  { %438 = vmatprep.subr.bf16.mxu0 %v483_v3  ;;  %467 = vmatprep.subr.bf16.mxu1 %v483_v3 }
   0xf   :  { %439 = vmatpush3.bf16.msra.mxu0 %v483_v3  ;;  %475 = vmatpush3.bf16.msra.mxu1 %v483_v3 }
  0x10   :  { %440 = vmatprep.subr.bf16.mxu0 %v484_v6  ;;  %468 = vmatprep.subr.bf16.mxu1 %v484_v6 }
  0x13   :  { %441 = vmatpush3.bf16.msra.mxu0 %v484_v6  ;;  %476 = vmatpush3.bf16.msra.mxu1 %v484_v6 }
  0x14   :  { %442 = vmatprep.subr.bf16.mxu0 %v485_v7  ;;  %469 = vmatprep.subr.bf16.mxu1 %v485_v7 }
  0x17   :  { %443 = vmatpush3.bf16.msra.mxu0 %v485_v7  ;;  %477 = vmatpush3.bf16.msra.mxu1 %v485_v7 }
  0x18   :  { %444 = vmatprep.subr.bf16.mxu0 %v486_v8  ;;  %470 = vmatprep.subr.bf16.mxu1 %v486_v8 }
  0x1b   :  { %445 = vmatpush3.bf16.msra.mxu0 %v486_v8  ;;  %478 = vmatpush3.bf16.msra.mxu1 %v486_v8 }
  0x1c   :  { %446 = vmatprep.subr.bf16.mxu0 %v487_v9  ;;  %471 = vmatprep.subr.bf16.mxu1 %v487_v9 }
  0x1f   :  { %447 = vmatpush3.bf16.msra.mxu0 %v487_v9  ;;  %479 = vmatpush3.bf16.msra.mxu1 %v487_v9 }
  0x22   :  { %449 = vmatmul.mubr.bf16.vlgmr.msra.gmra.mrb[0].mxu0 %v490_v10  ;;  %457 = vmatmul.mubr.bf16.vlgmr.msra.gmra.mrb[0].mxu1 %v491_v11 }
  0x23   :  { %452 = vmatprep.mubr.bf16.mxu0 %v492_v12  ;;  %460 = vmatprep.mubr.bf16.mxu1 %v493_v13 }
  0x2a   :  { %453 = vmatmul.mubr.bf16.gmra.mrb[4].mxu0 %v494_v14  ;;  %461 = vmatmul.mubr.bf16.gmra.mrb[4].mxu1 %v495_v15 }
  0xf5   :  { %v450_v16 = vpop.f32.mrb[0].mxu0  ;;  %v458_v17 = vpop.f32.mrb[0].mxu1 }
  0xf6   :  { %v174_v18 = vpop.f32.mrb[1].mxu0  ;;  %v206_v19 = vpop.f32.mrb[1].mxu1 }
  0xf7   :  { %v451_v20 = vpop.f32.mrb[2].mxu0  ;;  %v459_v21 = vpop.f32.mrb[2].mxu1 }
  0xf8   :  { %v377_v22 = vpack.c.bf16 %v451_v20, %v450_v16  ;;  %v397_v23 = vpack.c.bf16 %v459_v21, %v458_v17  ;;  %v177_v24 = vpop.f32.mrb[3].mxu0  ;;  %v209_v25 = vpop.f32.mrb[3].mxu1 }
  0xf9   :  { %v372_v26 = vpack.c.bf16 %v177_v24, %v174_v18  ;;  %v392_v27 = vpack.c.bf16 %v209_v25, %v206_v19 }
  0xfa   :  { %409 = vst [vmem:[%s585_s2 + $0x8] sm:$0xff] %v377_v22   ;;  %413 = vst [vmem:[%s585_s2 + $0x28] sm:$0xff] %v397_v23  }
  0xfb   :  { %373 = vst [vmem:[%s585_s2] sm:$0xff] %v372_v26   ;;  %412 = vst [vmem:[%s585_s2 + $0x20] sm:$0xff] %v392_v27  }
  0xfd   :  { %v454_v28 = vpop.f32.mrb[4].mxu0  ;;  %v462_v29 = vpop.f32.mrb[4].mxu1 }
  0xfe   :  { %v190_v30 = vpop.f32.mrb[5].mxu0  ;;  %v222_v31 = vpop.f32.mrb[5].mxu1 }
  0xff   :  { %v455_v32 = vpop.f32.mrb[6].mxu0  ;;  %v463_v33 = vpop.f32.mrb[6].mxu1 }
 0x100   :  { %v387_v34 = vpack.c.bf16 %v455_v32, %v454_v28  ;;  %v407_v35 = vpack.c.bf16 %v463_v33, %v462_v29  ;;  %v193_v36 = vpop.f32.mrb[7].mxu0  ;;  %v225_v37 = vpop.f32.mrb[7].mxu1 }
 0x101   :  { %v382_v38 = vpack.c.bf16 %v193_v36, %v190_v30  ;;  %v402_v39 = vpack.c.bf16 %v225_v37, %v222_v31 }
 0x102   :  { %411 = vst [vmem:[%s585_s2 + $0x18] sm:$0xff] %v387_v34   ;;  %415 = vst [vmem:[%s585_s2 + $0x38] sm:$0xff] %v407_v35  }
 0x103   :  { %410 = vst [vmem:[%s585_s2 + $0x10] sm:$0xff] %v382_v38   ;;  %414 = vst [vmem:[%s585_s2 + $0x30] sm:$0xff] %v402_v39  }

// kernel: _forward.7
= control target key start
LH: loop header
LB: loop body
LE: loop exit
PB: predicated region body
PF: predicated region fallthrough
CT: control target
= control target key end

     0   :  { %v534_v0 = vmov 0.0   ;;  %s666_s0 = inlined_call_operand.<no memory space> [shape: s32[1,1], index: 0, kind: input, shape index: {}]   ;;  %s667_s1 = inlined_call_operand.<no memory space> [shape: s32[1], index: 1, kind: input, shape index: {}]   ;;  %s668_s3 = inlined_call_operand.vmem [shape: bf16[128,128], index: 3, kind: input, shape index: {}]   ;;  %s669_s4 = inlined_call_operand.vmem [shape: f32[1,128], index: 4, kind: input, shape index: {}]   ;;  %s670_s5 = inlined_call_operand.vmem [shape: f32[128,128], index: 5, kind: output, shape index: {}]   ;;  %s671_s2 = inlined_call_operand.vmem [shape: bf16[128,128], index: 2, kind: input, shape index: {}]  }
   0x1   :  { %p42_p0 = scmp.lt.s32.totalorder %s666_s0, 0  ;;  %55 = vst [vmem:[#allocation2] sm:$0xff] %v534_v0  ;;  %56 = vst [vmem:[#allocation2 + $0x8] sm:$0xff] %v534_v0  ;;  %p435_p1 = scmp.le.s32.totalorder %s667_s1, 0 }
   0x2   :  { %57 = vst [vmem:[#allocation2 + $0x10] sm:$0xff] %v534_v0  ;;  %58 = vst [vmem:[#allocation2 + $0x18] sm:$0xff] %v534_v0  ;;  %v518_v1 = vld [vmem:[%s668_s3] sm:$0xff] (!%p435_p1)   ;;  %v519_v2 = vld [vmem:[%s668_s3 + $0x8] sm:$0xff] (!%p435_p1)  }
   0x3   :  { %59 = vst [vmem:[#allocation2 + $0x20] sm:$0xff] %v534_v0  ;;  %60 = vst [vmem:[#allocation2 + $0x28] sm:$0xff] %v534_v0  ;;  %s673_s0 = smov (!%p42_p0, %s666_s0), 0  ;;  %75 = sbr.rel (%p435_p1) target bundleno = 262 (0x106), region = 21 }
   0x4   :  { %61 = vst [vmem:[#allocation2 + $0x30] sm:$0xff] %v534_v0  ;;  %62 = vst [vmem:[#allocation2 + $0x38] sm:$0xff] %v534_v0  ;;  %s433_s24 = sshll.u32 %s673_s0, 2  ;;  %469 = vmatprep.subr.bf16.mxu0 (!%p435_p1), %v518_v1  ;;  %501 = vmatprep.subr.bf16.mxu1 (!%p435_p1), %v518_v1  ;;  %v520_v3 = vld [vmem:[%s668_s3 + $0x10] sm:$0xff] (!%p435_p1)   ;;  %v521_v4 = vld [vmem:[%s668_s3 + $0x18] sm:$0xff] (!%p435_p1)  }
   0x5   :  { %63 = vst [vmem:[#allocation2 + $0x40] sm:$0xff] %v534_v0  ;;  %64 = vst [vmem:[#allocation2 + $0x48] sm:$0xff] %v534_v0  ;;  %s578_s27 = scalar_lea.vmem %s671_s2, %s433_s24  ;;  %470 = vmatpush3.bf16.msra.mxu0 (!%p435_p1), %v518_v1  ;;  %509 = vmatpush3.bf16.msra.mxu1 (!%p435_p1), %v518_v1  ;;  %v522_v7 = vld [vmem:[%s668_s3 + $0x20] sm:$0xff] (!%p435_p1)   ;;  %v523_v8 = vld [vmem:[%s668_s3 + $0x28] sm:$0xff] (!%p435_p1)  }
   0x6   :  { %65 = vst [vmem:[#allocation2 + $0x50] sm:$0xff] %v534_v0  ;;  %66 = vst [vmem:[#allocation2 + $0x58] sm:$0xff] %v534_v0  ;;  %471 = vmatprep.subr.bf16.mxu0 (!%p435_p1), %v519_v2  ;;  %502 = vmatprep.subr.bf16.mxu1 (!%p435_p1), %v519_v2  ;;  %v526_v5 = vld [vmem:[%s578_s27] sm:$0xff] (!%p435_p1)   ;;  %v524_v9 = vld [vmem:[%s668_s3 + $0x30] sm:$0xff] (!%p435_p1)  }
   0x7   :  { %67 = vst [vmem:[#allocation2 + $0x60] sm:$0xff] %v534_v0  ;;  %68 = vst [vmem:[#allocation2 + $0x68] sm:$0xff] %v534_v0  ;;  %v527_v6 = vld [vmem:[%s578_s27 + $0x20] sm:$0xff] (!%p435_p1)   ;;  %485 = vmatprep.mubr.bf16.mxu0 (!%p435_p1), %v526_v5  ;;  %v525_v10 = vld [vmem:[%s668_s3 + $0x38] sm:$0xff] (!%p435_p1)  }
   0x8   :  { %69 = vst [vmem:[#allocation2 + $0x70] sm:$0xff] %v534_v0  ;;  %70 = vst [vmem:[#allocation2 + $0x78] sm:$0xff] %v534_v0  ;;  %493 = vmatprep.mubr.bf16.mxu1 (!%p435_p1), %v527_v6  ;;  %v528_v11 = vld [vmem:[%s578_s27 + $0x8] sm:$0xff] (!%p435_p1)   ;;  %v530_v13 = vld [vmem:[%s578_s27 + $0x10] sm:$0xff] (!%p435_p1)  }
   0x9   :  { %472 = vmatpush3.bf16.msra.mxu0 (!%p435_p1), %v519_v2  ;;  %510 = vmatpush3.bf16.msra.mxu1 (!%p435_p1), %v519_v2  ;;  %v529_v12 = vld [vmem:[%s578_s27 + $0x28] sm:$0xff] (!%p435_p1)   ;;  %v531_v14 = vld [vmem:[%s578_s27 + $0x30] sm:$0xff] (!%p435_p1)   ;;  %v532_v15 = vld [vmem:[%s578_s27 + $0x18] sm:$0xff] (!%p435_p1)  }
   0xa   :  { %473 = vmatprep.subr.bf16.mxu0 %v520_v3  ;;  %503 = vmatprep.subr.bf16.mxu1 %v520_v3  ;;  %v533_v16 = vld [vmem:[%s578_s27 + $0x38] sm:$0xff]   ;;  %v94_v17 = vld [vmem:[#allocation2 + $0x10] sm:$0xff]  ;;  %v92_v19 = vld [vmem:[#allocation2] sm:$0xff] }
   0xb   :  { %v95_v23 = vld [vmem:[#allocation2 + $0x18] sm:$0xff]  ;;  %v93_v29 = vld [vmem:[#allocation2 + $0x8] sm:$0xff]  ;;  %v98_v41 = vld [vmem:[#allocation2 + $0x30] sm:$0xff] }
   0xc   :  { %v100_v20 = vld [vmem:[#allocation2 + $0x40] sm:$0xff]  ;;  %v101_v30 = vld [vmem:[#allocation2 + $0x48] sm:$0xff]  ;;  %v99_v47 = vld [vmem:[#allocation2 + $0x38] sm:$0xff] }
   0xd   :  { %474 = vmatpush3.bf16.msra.mxu0 %v520_v3  ;;  %511 = vmatpush3.bf16.msra.mxu1 %v520_v3  ;;  %v102_v18 = vld [vmem:[#allocation2 + $0x50] sm:$0xff]  ;;  %v103_v24 = vld [vmem:[#allocation2 + $0x58] sm:$0xff]  ;;  %v96_v43 = vld [vmem:[#allocation2 + $0x20] sm:$0xff] }
   0xe   :  { %475 = vmatprep.subr.bf16.mxu0 %v521_v4  ;;  %504 = vmatprep.subr.bf16.mxu1 %v521_v4  ;;  %v104_v44 = vld [vmem:[#allocation2 + $0x60] sm:$0xff]  ;;  %v97_v53 = vld [vmem:[#allocation2 + $0x28] sm:$0xff] }
   0xf   :  { %v106_v42 = vld [vmem:[#allocation2 + $0x70] sm:$0xff]  ;;  %v107_v48 = vld [vmem:[#allocation2 + $0x78] sm:$0xff]  ;;  %v105_v54 = vld [vmem:[#allocation2 + $0x68] sm:$0xff] }
  0x11   :  { %476 = vmatpush3.bf16.msra.mxu0 %v521_v4  ;;  %512 = vmatpush3.bf16.msra.mxu1 %v521_v4 }
  0x12   :  { %477 = vmatprep.subr.bf16.mxu0 %v522_v7  ;;  %505 = vmatprep.subr.bf16.mxu1 %v522_v7 }
  0x15   :  { %478 = vmatpush3.bf16.msra.mxu0 %v522_v7  ;;  %513 = vmatpush3.bf16.msra.mxu1 %v522_v7 }
  0x16   :  { %479 = vmatprep.subr.bf16.mxu0 %v523_v8  ;;  %506 = vmatprep.subr.bf16.mxu1 %v523_v8 }
  0x19   :  { %480 = vmatpush3.bf16.msra.mxu0 %v523_v8  ;;  %514 = vmatpush3.bf16.msra.mxu1 %v523_v8 }
  0x1a   :  { %481 = vmatprep.subr.bf16.mxu0 %v524_v9  ;;  %507 = vmatprep.subr.bf16.mxu1 %v524_v9 }
  0x1d   :  { %482 = vmatpush3.bf16.msra.mxu0 %v524_v9  ;;  %515 = vmatpush3.bf16.msra.mxu1 %v524_v9 }
  0x1e   :  { %483 = vmatprep.subr.bf16.mxu0 %v525_v10  ;;  %508 = vmatprep.subr.bf16.mxu1 %v525_v10 }
  0x21   :  { %484 = vmatpush3.bf16.msra.mxu0 %v525_v10  ;;  %516 = vmatpush3.bf16.msra.mxu1 %v525_v10 }
  0x24   :  { %486 = vmatmul.mubr.bf16.vlgmr.msra.gmra.mrb[0].mxu0 %v528_v11  ;;  %494 = vmatmul.mubr.bf16.vlgmr.msra.gmra.mrb[0].mxu1 %v529_v12 }
  0x25   :  { %489 = vmatprep.mubr.bf16.mxu0 %v530_v13  ;;  %497 = vmatprep.mubr.bf16.mxu1 %v531_v14 }
  0x2c   :  { %490 = vmatmul.mubr.bf16.gmra.mrb[4].mxu0 %v532_v15  ;;  %498 = vmatmul.mubr.bf16.gmra.mrb[4].mxu1 %v533_v16 }
  0xf7   :  { %v487_v21 = vpop.f32.mrb[0].mxu0  ;;  %v495_v22 = vpop.f32.mrb[0].mxu1 }
  0xf8   :  { %v319_v25 = vadd.f32 %v487_v21, %v94_v17  ;;  %v327_v26 = vadd.f32 %v495_v22, %v102_v18  ;;  %v254_v27 = vpop.f32.mrb[1].mxu0  ;;  %v286_v28 = vpop.f32.mrb[1].mxu1 }
  0xf9   :  { %v317_v31 = vadd.f32 %v254_v27, %v92_v19  ;;  %v325_v32 = vadd.f32 %v286_v28, %v100_v20  ;;  %v488_v33 = vpop.f32.mrb[2].mxu0  ;;  %v496_v34 = vpop.f32.mrb[2].mxu1 }
  0xfa   :  { %335 = vst [vmem:[#allocation2 + $0x10] sm:$0xff] %v319_v25  ;;  %343 = vst [vmem:[#allocation2 + $0x50] sm:$0xff] %v327_v26  ;;  %v320_v35 = vadd.f32 %v488_v33, %v95_v23  ;;  %v328_v36 = vadd.f32 %v496_v34, %v103_v24  ;;  %v257_v37 = vpop.f32.mrb[3].mxu0  ;;  %v289_v38 = vpop.f32.mrb[3].mxu1 }
  0xfb   :  { %333 = vst [vmem:[#allocation2] sm:$0xff] %v317_v31  ;;  %341 = vst [vmem:[#allocation2 + $0x40] sm:$0xff] %v325_v32  ;;  %v318_v39 = vadd.f32 %v257_v37, %v93_v29  ;;  %v326_v40 = vadd.f32 %v289_v38, %v101_v30 }
  0xfc   :  { %336 = vst [vmem:[#allocation2 + $0x18] sm:$0xff] %v320_v35  ;;  %344 = vst [vmem:[#allocation2 + $0x58] sm:$0xff] %v328_v36 }
  0xfd   :  { %334 = vst [vmem:[#allocation2 + $0x8] sm:$0xff] %v318_v39  ;;  %342 = vst [vmem:[#allocation2 + $0x48] sm:$0xff] %v326_v40 }
  0xff   :  { %v491_v45 = vpop.f32.mrb[4].mxu0  ;;  %v499_v46 = vpop.f32.mrb[4].mxu1 }
 0x100   :  { %v323_v49 = vadd.f32 %v491_v45, %v98_v41  ;;  %v331_v50 = vadd.f32 %v499_v46, %v106_v42  ;;  %v270_v51 = vpop.f32.mrb[5].mxu0  ;;  %v302_v52 = vpop.f32.mrb[5].mxu1 }
 0x101   :  { %v321_v55 = vadd.f32 %v270_v51, %v96_v43  ;;  %v329_v56 = vadd.f32 %v302_v52, %v104_v44  ;;  %v492_v57 = vpop.f32.mrb[6].mxu0  ;;  %v500_v58 = vpop.f32.mrb[6].mxu1 }
 0x102   :  { %339 = vst [vmem:[#allocation2 + $0x30] sm:$0xff] %v323_v49  ;;  %347 = vst [vmem:[#allocation2 + $0x70] sm:$0xff] %v331_v50  ;;  %v324_v59 = vadd.f32 %v492_v57, %v99_v47  ;;  %v332_v60 = vadd.f32 %v500_v58, %v107_v48  ;;  %v273_v61 = vpop.f32.mrb[7].mxu0  ;;  %v305_v62 = vpop.f32.mrb[7].mxu1 }
 0x103   :  { %337 = vst [vmem:[#allocation2 + $0x20] sm:$0xff] %v321_v55  ;;  %345 = vst [vmem:[#allocation2 + $0x60] sm:$0xff] %v329_v56  ;;  %v322_v63 = vadd.f32 %v273_v61, %v97_v53  ;;  %v330_v0 = vadd.f32 %v305_v62, %v105_v54 }
 0x104   :  { %340 = vst [vmem:[#allocation2 + $0x38] sm:$0xff] %v324_v59  ;;  %348 = vst [vmem:[#allocation2 + $0x78] sm:$0xff] %v332_v60 }
 0x105   :  { %338 = vst [vmem:[#allocation2 + $0x28] sm:$0xff] %v322_v63  ;;  %346 = vst [vmem:[#allocation2 + $0x68] sm:$0xff] %v330_v0 }
 0x106 PF:  { %v352_v1 = vld [vmem:[#allocation2] sm:$0xff]  ;;  %v353_v3 = vld [vmem:[#allocation2 + $0x8] sm:$0xff]  ;;  %v354_v6 = vld [vmem:[#allocation2 + $0x10] sm:$0xff] }
 0x107   :  { %v452_v2 = vld [vmem:[%s669_s4] ss:$0 sm:$0xff]  ;;  %v355_v7 = vld [vmem:[#allocation2 + $0x18] sm:$0xff] }
 0x108   :  { %v375_v4 = vadd.f32 %v452_v2, %v352_v1  ;;  %v376_v5 = vadd.f32 %v452_v2, %v353_v3  ;;  %v377_v9 = vadd.f32 %v452_v2, %v354_v6  ;;  %v378_v10 = vadd.f32 %v452_v2, %v355_v7  ;;  %v360_v19 = vld [vmem:[#allocation2 + $0x40] sm:$0xff]  ;;  %v361_v20 = vld [vmem:[#allocation2 + $0x48] sm:$0xff] }
 0x109   :  { %v358_v13 = vld [vmem:[#allocation2 + $0x30] sm:$0xff]  ;;  %v363_v26 = vld [vmem:[#allocation2 + $0x58] sm:$0xff]  ;;  %v383_v31 = vadd.f32 %v452_v2, %v360_v19  ;;  %v384_v32 = vadd.f32 %v452_v2, %v361_v20 }
 0x10a   :  { %v356_v8 = vld [vmem:[#allocation2 + $0x20] sm:$0xff]  ;;  %v391_v15 = vmax.f32 %v375_v4, 0.0  ;;  %v392_v16 = vmax.f32 %v376_v5, 0.0  ;;  %v381_v18 = vadd.f32 %v452_v2, %v358_v13  ;;  %v362_v21 = vld [vmem:[#allocation2 + $0x50] sm:$0xff]  ;;  %v393_v22 = vmax.f32 %v377_v9, 0.0 }
 0x10b   :  { %v379_v11 = vadd.f32 %v452_v2, %v356_v8  ;;  %v359_v14 = vld [vmem:[#allocation2 + $0x38] sm:$0xff]  ;;  %v394_v23 = vmax.f32 %v378_v10, 0.0  ;;  %v364_v27 = vld [vmem:[#allocation2 + $0x60] sm:$0xff]  ;;  %v366_v33 = vld [vmem:[#allocation2 + $0x70] sm:$0xff]  ;;  %v385_v36 = vadd.f32 %v452_v2, %v362_v21  ;;  %v386_v37 = vadd.f32 %v452_v2, %v363_v26 }
 0x10c   :  { %v357_v12 = vld [vmem:[#allocation2 + $0x28] sm:$0xff]  ;;  %v382_v25 = vadd.f32 %v452_v2, %v359_v14  ;;  %407 = vst [vmem:[%s670_s5] sm:$0xff] %v391_v15  ;;  %408 = vst [vmem:[%s670_s5 + $0x8] sm:$0xff] %v392_v16  ;;  %v397_v30 = vmax.f32 %v381_v18, 0.0  ;;  %v367_v34 = vld [vmem:[#allocation2 + $0x78] sm:$0xff]  ;;  %v387_v38 = vadd.f32 %v452_v2, %v364_v27  ;;  %v399_v39 = vmax.f32 %v383_v31, 0.0 }
 0x10d   :  { %v380_v17 = vadd.f32 %v452_v2, %v357_v12  ;;  %v395_v24 = vmax.f32 %v379_v11, 0.0  ;;  %v365_v28 = vld [vmem:[#allocation2 + $0x68] sm:$0xff]  ;;  %409 = vst [vmem:[%s670_s5 + $0x10] sm:$0xff] %v393_v22  ;;  %410 = vst [vmem:[%s670_s5 + $0x18] sm:$0xff] %v394_v23  ;;  %v400_v40 = vmax.f32 %v384_v32, 0.0  ;;  %v389_v42 = vadd.f32 %v452_v2, %v366_v33 }
 0x10e   :  { %v398_v35 = vmax.f32 %v382_v25, 0.0  ;;  %413 = vst [vmem:[%s670_s5 + $0x30] sm:$0xff] %v397_v30  ;;  %v388_v41 = vadd.f32 %v452_v2, %v365_v28  ;;  %v401_v43 = vmax.f32 %v385_v36, 0.0  ;;  %v402_v44 = vmax.f32 %v386_v37, 0.0  ;;  %415 = vst [vmem:[%s670_s5 + $0x40] sm:$0xff] %v399_v39 }
 0x10f   :  { %v396_v29 = vmax.f32 %v380_v17, 0.0  ;;  %411 = vst [vmem:[%s670_s5 + $0x20] sm:$0xff] %v395_v24  ;;  %v403_v45 = vmax.f32 %v387_v38, 0.0  ;;  %v390_v46 = vadd.f32 %v452_v2, %v367_v34  ;;  %416 = vst [vmem:[%s670_s5 + $0x48] sm:$0xff] %v400_v40  ;;  %v405_v48 = vmax.f32 %v389_v42, 0.0 }
 0x110   :  { %414 = vst [vmem:[%s670_s5 + $0x38] sm:$0xff] %v398_v35  ;;  %v404_v47 = vmax.f32 %v388_v41, 0.0  ;;  %417 = vst [vmem:[%s670_s5 + $0x50] sm:$0xff] %v401_v43 }
 0x111   :  { %412 = vst [vmem:[%s670_s5 + $0x28] sm:$0xff] %v396_v29  ;;  %418 = vst [vmem:[%s670_s5 + $0x58] sm:$0xff] %v402_v44  ;;  %v406_v49 = vmax.f32 %v390_v46, 0.0 }
 0x112   :  { %419 = vst [vmem:[%s670_s5 + $0x60] sm:$0xff] %v403_v45  ;;  %420 = vst [vmem:[%s670_s5 + $0x68] sm:$0xff] %v404_v47 }
 0x113   :  { %421 = vst [vmem:[%s670_s5 + $0x70] sm:$0xff] %v405_v48  ;;  %422 = vst [vmem:[%s670_s5 + $0x78] sm:$0xff] %v406_v49 }

// kernel: _forward.5
= control target key start
LH: loop header
LB: loop body
LE: loop exit
PB: predicated region body
PF: predicated region fallthrough
CT: control target
= control target key end

     0   :  { %v677_v0 = vmov 0.0   ;;  %s785_s0 = inlined_call_operand.<no memory space> [shape: s32[1,1], index: 0, kind: input, shape index: {}]   ;;  %s786_s1 = inlined_call_operand.<no memory space> [shape: s32[1], index: 1, kind: input, shape index: {}]   ;;  %s787_s3 = inlined_call_operand.vmem [shape: bf16[128,128], index: 3, kind: input, shape index: {}]   ;;  %s788_s4 = inlined_call_operand.vmem [shape: f32[1,128], index: 4, kind: input, shape index: {}]   ;;  %s789_s5 = inlined_call_operand.vmem [shape: bf16[128,128], index: 5, kind: output, shape index: {}]   ;;  %s790_s2 = inlined_call_operand.vmem [shape: bf16[128,128], index: 2, kind: input, shape index: {}]  }
   0x1   :  { %p42_p0 = scmp.lt.s32.totalorder %s785_s0, 0  ;;  %55 = vst [vmem:[#allocation2] sm:$0xff] %v677_v0  ;;  %56 = vst [vmem:[#allocation2 + $0x8] sm:$0xff] %v677_v0  ;;  %p499_p1 = scmp.le.s32.totalorder %s786_s1, 0 }
   0x2   :  { %57 = vst [vmem:[#allocation2 + $0x10] sm:$0xff] %v677_v0  ;;  %58 = vst [vmem:[#allocation2 + $0x18] sm:$0xff] %v677_v0  ;;  %v661_v1 = vld [vmem:[%s787_s3] sm:$0xff] (!%p499_p1)   ;;  %v662_v2 = vld [vmem:[%s787_s3 + $0x8] sm:$0xff] (!%p499_p1)  }
   0x3   :  { %59 = vst [vmem:[#allocation2 + $0x20] sm:$0xff] %v677_v0  ;;  %60 = vst [vmem:[#allocation2 + $0x28] sm:$0xff] %v677_v0  ;;  %s792_s0 = smov (!%p42_p0, %s785_s0), 0  ;;  %75 = sbr.rel (%p499_p1) target bundleno = 262 (0x106), region = 21 }
   0x4   :  { %61 = vst [vmem:[#allocation2 + $0x30] sm:$0xff] %v677_v0  ;;  %62 = vst [vmem:[#allocation2 + $0x38] sm:$0xff] %v677_v0  ;;  %s497_s24 = sshll.u32 %s792_s0, 2  ;;  %612 = vmatprep.subr.bf16.mxu0 (!%p499_p1), %v661_v1  ;;  %644 = vmatprep.subr.bf16.mxu1 (!%p499_p1), %v661_v1  ;;  %v663_v3 = vld [vmem:[%s787_s3 + $0x10] sm:$0xff] (!%p499_p1)   ;;  %v664_v4 = vld [vmem:[%s787_s3 + $0x18] sm:$0xff] (!%p499_p1)  }
   0x5   :  { %63 = vst [vmem:[#allocation2 + $0x40] sm:$0xff] %v677_v0  ;;  %64 = vst [vmem:[#allocation2 + $0x48] sm:$0xff] %v677_v0  ;;  %s721_s27 = scalar_lea.vmem %s790_s2, %s497_s24  ;;  %613 = vmatpush3.bf16.msra.mxu0 (!%p499_p1), %v661_v1  ;;  %652 = vmatpush3.bf16.msra.mxu1 (!%p499_p1), %v661_v1  ;;  %v665_v7 = vld [vmem:[%s787_s3 + $0x20] sm:$0xff] (!%p499_p1)   ;;  %v666_v8 = vld [vmem:[%s787_s3 + $0x28] sm:$0xff] (!%p499_p1)  }
   0x6   :  { %65 = vst [vmem:[#allocation2 + $0x50] sm:$0xff] %v677_v0  ;;  %66 = vst [vmem:[#allocation2 + $0x58] sm:$0xff] %v677_v0  ;;  %614 = vmatprep.subr.bf16.mxu0 (!%p499_p1), %v662_v2  ;;  %645 = vmatprep.subr.bf16.mxu1 (!%p499_p1), %v662_v2  ;;  %v669_v5 = vld [vmem:[%s721_s27] sm:$0xff] (!%p499_p1)   ;;  %v667_v9 = vld [vmem:[%s787_s3 + $0x30] sm:$0xff] (!%p499_p1)  }
   0x7   :  { %67 = vst [vmem:[#allocation2 + $0x60] sm:$0xff] %v677_v0  ;;  %68 = vst [vmem:[#allocation2 + $0x68] sm:$0xff] %v677_v0  ;;  %v670_v6 = vld [vmem:[%s721_s27 + $0x20] sm:$0xff] (!%p499_p1)   ;;  %628 = vmatprep.mubr.bf16.mxu0 (!%p499_p1), %v669_v5  ;;  %v668_v10 = vld [vmem:[%s787_s3 + $0x38] sm:$0xff] (!%p499_p1)  }
   0x8   :  { %69 = vst [vmem:[#allocation2 + $0x70] sm:$0xff] %v677_v0  ;;  %70 = vst [vmem:[#allocation2 + $0x78] sm:$0xff] %v677_v0  ;;  %636 = vmatprep.mubr.bf16.mxu1 (!%p499_p1), %v670_v6  ;;  %v671_v11 = vld [vmem:[%s721_s27 + $0x8] sm:$0xff] (!%p499_p1)   ;;  %v673_v13 = vld [vmem:[%s721_s27 + $0x10] sm:$0xff] (!%p499_p1)  }
   0x9   :  { %615 = vmatpush3.bf16.msra.mxu0 (!%p499_p1), %v662_v2  ;;  %653 = vmatpush3.bf16.msra.mxu1 (!%p499_p1), %v662_v2  ;;  %v672_v12 = vld [vmem:[%s721_s27 + $0x28] sm:$0xff] (!%p499_p1)   ;;  %v674_v14 = vld [vmem:[%s721_s27 + $0x30] sm:$0xff] (!%p499_p1)   ;;  %v675_v15 = vld [vmem:[%s721_s27 + $0x18] sm:$0xff] (!%p499_p1)  }
   0xa   :  { %616 = vmatprep.subr.bf16.mxu0 %v663_v3  ;;  %646 = vmatprep.subr.bf16.mxu1 %v663_v3  ;;  %v676_v16 = vld [vmem:[%s721_s27 + $0x38] sm:$0xff]   ;;  %v94_v17 = vld [vmem:[#allocation2 + $0x10] sm:$0xff]  ;;  %v92_v19 = vld [vmem:[#allocation2] sm:$0xff] }
   0xb   :  { %v95_v23 = vld [vmem:[#allocation2 + $0x18] sm:$0xff]  ;;  %v93_v29 = vld [vmem:[#allocation2 + $0x8] sm:$0xff]  ;;  %v98_v41 = vld [vmem:[#allocation2 + $0x30] sm:$0xff] }
   0xc   :  { %v100_v20 = vld [vmem:[#allocation2 + $0x40] sm:$0xff]  ;;  %v101_v30 = vld [vmem:[#allocation2 + $0x48] sm:$0xff]  ;;  %v99_v47 = vld [vmem:[#allocation2 + $0x38] sm:$0xff] }
   0xd   :  { %617 = vmatpush3.bf16.msra.mxu0 %v663_v3  ;;  %654 = vmatpush3.bf16.msra.mxu1 %v663_v3  ;;  %v102_v18 = vld [vmem:[#allocation2 + $0x50] sm:$0xff]  ;;  %v103_v24 = vld [vmem:[#allocation2 + $0x58] sm:$0xff]  ;;  %v96_v43 = vld [vmem:[#allocation2 + $0x20] sm:$0xff] }
   0xe   :  { %618 = vmatprep.subr.bf16.mxu0 %v664_v4  ;;  %647 = vmatprep.subr.bf16.mxu1 %v664_v4  ;;  %v104_v44 = vld [vmem:[#allocation2 + $0x60] sm:$0xff]  ;;  %v97_v53 = vld [vmem:[#allocation2 + $0x28] sm:$0xff] }
   0xf   :  { %v106_v42 = vld [vmem:[#allocation2 + $0x70] sm:$0xff]  ;;  %v107_v48 = vld [vmem:[#allocation2 + $0x78] sm:$0xff]  ;;  %v105_v54 = vld [vmem:[#allocation2 + $0x68] sm:$0xff] }
  0x11   :  { %619 = vmatpush3.bf16.msra.mxu0 %v664_v4  ;;  %655 = vmatpush3.bf16.msra.mxu1 %v664_v4 }
  0x12   :  { %620 = vmatprep.subr.bf16.mxu0 %v665_v7  ;;  %648 = vmatprep.subr.bf16.mxu1 %v665_v7 }
  0x15   :  { %621 = vmatpush3.bf16.msra.mxu0 %v665_v7  ;;  %656 = vmatpush3.bf16.msra.mxu1 %v665_v7 }
  0x16   :  { %622 = vmatprep.subr.bf16.mxu0 %v666_v8  ;;  %649 = vmatprep.subr.bf16.mxu1 %v666_v8 }
  0x19   :  { %623 = vmatpush3.bf16.msra.mxu0 %v666_v8  ;;  %657 = vmatpush3.bf16.msra.mxu1 %v666_v8 }
  0x1a   :  { %624 = vmatprep.subr.bf16.mxu0 %v667_v9  ;;  %650 = vmatprep.subr.bf16.mxu1 %v667_v9 }
  0x1d   :  { %625 = vmatpush3.bf16.msra.mxu0 %v667_v9  ;;  %658 = vmatpush3.bf16.msra.mxu1 %v667_v9 }
  0x1e   :  { %626 = vmatprep.subr.bf16.mxu0 %v668_v10  ;;  %651 = vmatprep.subr.bf16.mxu1 %v668_v10 }
  0x21   :  { %627 = vmatpush3.bf16.msra.mxu0 %v668_v10  ;;  %659 = vmatpush3.bf16.msra.mxu1 %v668_v10 }
  0x24   :  { %629 = vmatmul.mubr.bf16.vlgmr.msra.gmra.mrb[0].mxu0 %v671_v11  ;;  %637 = vmatmul.mubr.bf16.vlgmr.msra.gmra.mrb[0].mxu1 %v672_v12 }
  0x25   :  { %632 = vmatprep.mubr.bf16.mxu0 %v673_v13  ;;  %640 = vmatprep.mubr.bf16.mxu1 %v674_v14 }
  0x2c   :  { %633 = vmatmul.mubr.bf16.gmra.mrb[4].mxu0 %v675_v15  ;;  %641 = vmatmul.mubr.bf16.gmra.mrb[4].mxu1 %v676_v16 }
  0xf7   :  { %v630_v21 = vpop.f32.mrb[0].mxu0  ;;  %v638_v22 = vpop.f32.mrb[0].mxu1 }
  0xf8   :  { %v319_v25 = vadd.f32 %v630_v21, %v94_v17  ;;  %v327_v26 = vadd.f32 %v638_v22, %v102_v18  ;;  %v254_v27 = vpop.f32.mrb[1].mxu0  ;;  %v286_v28 = vpop.f32.mrb[1].mxu1 }
  0xf9   :  { %v317_v31 = vadd.f32 %v254_v27, %v92_v19  ;;  %v325_v32 = vadd.f32 %v286_v28, %v100_v20  ;;  %v631_v33 = vpop.f32.mrb[2].mxu0  ;;  %v639_v34 = vpop.f32.mrb[2].mxu1 }
  0xfa   :  { %335 = vst [vmem:[#allocation2 + $0x10] sm:$0xff] %v319_v25  ;;  %343 = vst [vmem:[#allocation2 + $0x50] sm:$0xff] %v327_v26  ;;  %v320_v35 = vadd.f32 %v631_v33, %v95_v23  ;;  %v328_v36 = vadd.f32 %v639_v34, %v103_v24  ;;  %v257_v37 = vpop.f32.mrb[3].mxu0  ;;  %v289_v38 = vpop.f32.mrb[3].mxu1 }
  0xfb   :  { %333 = vst [vmem:[#allocation2] sm:$0xff] %v317_v31  ;;  %341 = vst [vmem:[#allocation2 + $0x40] sm:$0xff] %v325_v32  ;;  %v318_v39 = vadd.f32 %v257_v37, %v93_v29  ;;  %v326_v40 = vadd.f32 %v289_v38, %v101_v30 }
  0xfc   :  { %336 = vst [vmem:[#allocation2 + $0x18] sm:$0xff] %v320_v35  ;;  %344 = vst [vmem:[#allocation2 + $0x58] sm:$0xff] %v328_v36 }
  0xfd   :  { %334 = vst [vmem:[#allocation2 + $0x8] sm:$0xff] %v318_v39  ;;  %342 = vst [vmem:[#allocation2 + $0x48] sm:$0xff] %v326_v40 }
  0xff   :  { %v634_v45 = vpop.f32.mrb[4].mxu0  ;;  %v642_v46 = vpop.f32.mrb[4].mxu1 }
 0x100   :  { %v323_v49 = vadd.f32 %v634_v45, %v98_v41  ;;  %v331_v50 = vadd.f32 %v642_v46, %v106_v42  ;;  %v270_v51 = vpop.f32.mrb[5].mxu0  ;;  %v302_v52 = vpop.f32.mrb[5].mxu1 }
 0x101   :  { %v321_v55 = vadd.f32 %v270_v51, %v96_v43  ;;  %v329_v56 = vadd.f32 %v302_v52, %v104_v44  ;;  %v635_v57 = vpop.f32.mrb[6].mxu0  ;;  %v643_v58 = vpop.f32.mrb[6].mxu1 }
 0x102   :  { %339 = vst [vmem:[#allocation2 + $0x30] sm:$0xff] %v323_v49  ;;  %347 = vst [vmem:[#allocation2 + $0x70] sm:$0xff] %v331_v50  ;;  %v324_v59 = vadd.f32 %v635_v57, %v99_v47  ;;  %v332_v60 = vadd.f32 %v643_v58, %v107_v48  ;;  %v273_v61 = vpop.f32.mrb[7].mxu0  ;;  %v305_v62 = vpop.f32.mrb[7].mxu1 }
 0x103   :  { %337 = vst [vmem:[#allocation2 + $0x20] sm:$0xff] %v321_v55  ;;  %345 = vst [vmem:[#allocation2 + $0x60] sm:$0xff] %v329_v56  ;;  %v322_v63 = vadd.f32 %v273_v61, %v97_v53  ;;  %v330_v0 = vadd.f32 %v305_v62, %v105_v54 }
 0x104   :  { %340 = vst [vmem:[#allocation2 + $0x38] sm:$0xff] %v324_v59  ;;  %348 = vst [vmem:[#allocation2 + $0x78] sm:$0xff] %v332_v60 }
 0x105   :  { %338 = vst [vmem:[#allocation2 + $0x28] sm:$0xff] %v322_v63  ;;  %346 = vst [vmem:[#allocation2 + $0x68] sm:$0xff] %v330_v0 }
 0x106 PF:  { %v352_v1 = vld [vmem:[#allocation2] sm:$0xff]  ;;  %v353_v2 = vld [vmem:[#allocation2 + $0x8] sm:$0xff]  ;;  %v354_v6 = vld [vmem:[#allocation2 + $0x10] sm:$0xff] }
 0x107   :  { %v516_v3 = vld [vmem:[%s788_s4] ss:$0 sm:$0xff]  ;;  %v355_v7 = vld [vmem:[#allocation2 + $0x18] sm:$0xff] }
 0x108   :  { %v375_v4 = vadd.f32 %v516_v3, %v352_v1  ;;  %v376_v5 = vadd.f32 %v516_v3, %v353_v2  ;;  %v377_v9 = vadd.f32 %v516_v3, %v354_v6  ;;  %v378_v10 = vadd.f32 %v516_v3, %v355_v7  ;;  %v360_v19 = vld [vmem:[#allocation2 + $0x40] sm:$0xff]  ;;  %v361_v20 = vld [vmem:[#allocation2 + $0x48] sm:$0xff] }
 0x109   :  { %v358_v13 = vld [vmem:[#allocation2 + $0x30] sm:$0xff]  ;;  %v363_v26 = vld [vmem:[#allocation2 + $0x58] sm:$0xff]  ;;  %v383_v31 = vadd.f32 %v516_v3, %v360_v19  ;;  %v384_v35 = vadd.f32 %v516_v3, %v361_v20 }
 0x10a   :  { %v356_v8 = vld [vmem:[#allocation2 + $0x20] sm:$0xff]  ;;  %v391_v15 = vmax.f32 %v375_v4, 0.0  ;;  %v392_v16 = vmax.f32 %v376_v5, 0.0  ;;  %v381_v18 = vadd.f32 %v516_v3, %v358_v13  ;;  %v362_v21 = vld [vmem:[#allocation2 + $0x50] sm:$0xff]  ;;  %v393_v22 = vmax.f32 %v377_v9, 0.0 }
 0x10b   :  { %v379_v12 = vadd.f32 %v516_v3, %v356_v8  ;;  %v359_v14 = vld [vmem:[#allocation2 + $0x38] sm:$0xff]  ;;  %v394_v23 = vmax.f32 %v378_v10, 0.0  ;;  %v364_v27 = vld [vmem:[#allocation2 + $0x60] sm:$0xff]  ;;  %v385_v36 = vadd.f32 %v516_v3, %v362_v21  ;;  %v366_v37 = vld [vmem:[#allocation2 + $0x70] sm:$0xff]  ;;  %v399_v40 = vmax.f32 %v383_v31, 0.0 }
 0x10c   :  { %v357_v11 = vld [vmem:[#allocation2 + $0x28] sm:$0xff]  ;;  %v382_v25 = vadd.f32 %v516_v3, %v359_v14  ;;  %v552_v28 = vpack.c.bf16 %v392_v16, %v391_v15  ;;  %v397_v30 = vmax.f32 %v381_v18, 0.0  ;;  %v367_v38 = vld [vmem:[#allocation2 + $0x78] sm:$0xff]  ;;  %v386_v41 = vadd.f32 %v516_v3, %v363_v26 }
 0x10d   :  { %v380_v17 = vadd.f32 %v516_v3, %v357_v11  ;;  %v395_v24 = vmax.f32 %v379_v12, 0.0  ;;  %v365_v32 = vld [vmem:[#allocation2 + $0x68] sm:$0xff]  ;;  %v557_v33 = vpack.c.bf16 %v394_v23, %v393_v22  ;;  %v387_v42 = vadd.f32 %v516_v3, %v364_v27 }
 0x10e   :  { %v398_v34 = vmax.f32 %v382_v25, 0.0  ;;  %553 = vst [vmem:[%s789_s5] sm:$0xff] %v552_v28   ;;  %v400_v44 = vmax.f32 %v384_v35, 0.0  ;;  %v401_v45 = vmax.f32 %v385_v36, 0.0  ;;  %v388_v46 = vadd.f32 %v516_v3, %v365_v32 }
 0x10f   :  { %v396_v29 = vmax.f32 %v380_v17, 0.0  ;;  %589 = vst [vmem:[%s789_s5 + $0x8] sm:$0xff] %v557_v33   ;;  %v402_v47 = vmax.f32 %v386_v41, 0.0  ;;  %v403_v48 = vmax.f32 %v387_v42, 0.0  ;;  %v389_v49 = vadd.f32 %v516_v3, %v366_v37 }
 0x110   :  { %v567_v43 = vpack.c.bf16 %v398_v34, %v397_v30  ;;  %v390_v50 = vadd.f32 %v516_v3, %v367_v38  ;;  %v572_v51 = vpack.c.bf16 %v400_v44, %v399_v40  ;;  %v404_v52 = vmax.f32 %v388_v46, 0.0 }
 0x111   :  { %v562_v39 = vpack.c.bf16 %v396_v29, %v395_v24  ;;  %v577_v53 = vpack.c.bf16 %v402_v47, %v401_v45  ;;  %v405_v54 = vmax.f32 %v389_v49, 0.0 }
 0x112   :  { %591 = vst [vmem:[%s789_s5 + $0x18] sm:$0xff] %v567_v43   ;;  %v406_v55 = vmax.f32 %v390_v50, 0.0  ;;  %592 = vst [vmem:[%s789_s5 + $0x20] sm:$0xff] %v572_v51   ;;  %v582_v56 = vpack.c.bf16 %v404_v52, %v403_v48 }
 0x113   :  { %590 = vst [vmem:[%s789_s5 + $0x10] sm:$0xff] %v562_v39   ;;  %593 = vst [vmem:[%s789_s5 + $0x28] sm:$0xff] %v577_v53  }
 0x114   :  { %v587_v57 = vpack.c.bf16 %v406_v55, %v405_v54  ;;  %594 = vst [vmem:[%s789_s5 + $0x30] sm:$0xff] %v582_v56  }
 0x116   :  { %595 = vst [vmem:[%s789_s5 + $0x38] sm:$0xff] %v587_v57  }

</bundles_post_ra>
